<compile_context>
chip_gen: v7x
topology: tpu7x:2x2x1
jax: 0.10.0
libtpu: 0.0.40
codegen_flags: <defaults>
</compile_context>

<pallas_src>
import functools

import jax
import jax.numpy as jnp
from jax import lax
from jax.experimental import pallas as pl
from jax.experimental.pallas import tpu as pltpu


# ----------------------------------------------------------------------------
# Fused kernel: one batch element per grid step.
# ----------------------------------------------------------------------------
def _fused_mha_kernel(x_ref, wq_ref, wk_ref, wv_ref, wp_ref, bp_ref, o_ref, *,
                      num_heads, head_size, scale):
    # x_ref : (1, T, C)      current batch's sequence
    # w*_ref: (C, C)         all-head Q/K/V weights, heads packed along columns
    # wp_ref: (C, C)         output projection weight (pre-transposed)
    # bp_ref: (1, C)         output projection bias
    # o_ref : (1, T, C)      result
    x = x_ref[0]                                                   # (T, C), native dtype

    # All-head Q/K/V: three (T,C)x(C,C) MXU matmuls with f32 accumulation.
    q = jnp.dot(x, wq_ref[...], preferred_element_type=jnp.float32)  # (T, C)
    k = jnp.dot(x, wk_ref[...], preferred_element_type=jnp.float32)  # (T, C)
    v = jnp.dot(x, wv_ref[...], preferred_element_type=jnp.float32)  # (T, C)

    T = q.shape[0]
    # Causal mask (tril), computed once per grid step and reused by all heads.
    row = lax.broadcasted_iota(jnp.int32, (T, T), 0)
    col = lax.broadcasted_iota(jnp.int32, (T, T), 1)
    causal = col <= row

    D = head_size
    head_outs = []
    for h in range(num_heads):               # static unroll; static slices
        qh = q[:, h * D:(h + 1) * D]         # (T, D)
        kh = k[:, h * D:(h + 1) * D]         # (T, D)
        vh = v[:, h * D:(h + 1) * D]         # (T, D)

        # scores scaled by n_embed ** -0.5, exactly as the reference Head.
        s = jnp.dot(qh, kh.T, preferred_element_type=jnp.float32) * scale
        s = jnp.where(causal, s, -jnp.inf)

        # numerically-stable softmax along the last axis
        m = jnp.max(s, axis=-1, keepdims=True)
        e = jnp.exp(s - m)
        denom = jnp.sum(e, axis=-1, keepdims=True)
        p = e * pl.reciprocal(denom, approx=True)        # EUP vrcp slot

        head_outs.append(jnp.dot(p, vh, preferred_element_type=jnp.float32))

    # head concat in VMEM: (T, H*D) == (T, C)
    y = jnp.concatenate(head_outs, axis=-1)

    # output projection + bias, lane-dense (T, C) result
    out = jnp.dot(y.astype(wp_ref.dtype), wp_ref[...],
                  preferred_element_type=jnp.float32)
    out = out + bp_ref[...].astype(jnp.float32)
    o_ref[0] = out.astype(o_ref.dtype)


# ----------------------------------------------------------------------------
# Wrapper
# ----------------------------------------------------------------------------
def multi_head_attention(x, wq, wk, wv, w_proj, b_proj):
    """
    x       : (B, T, C)
    wq/wk/wv: (H, C, D)   stacked per-head weights (pre-transposed: q = x @ Wq)
    w_proj  : (C, C)      projection weight (pre-transposed)
    b_proj  : (1, C)
    returns : (B, T, C)
    """
    B, T, C = x.shape
    H, _, D = wq.shape
    assert H * D == C, "num_heads * head_size must equal n_embed"
    scale = float(C) ** -0.5

    # One-time weight repack: (H, C, D) -> (C, H*D) so each of Q/K/V is a single
    # full-width matmul; head h lives in columns [h*D, (h+1)*D).
    wq_c = jnp.transpose(wq, (1, 0, 2)).reshape(C, H * D)
    wk_c = jnp.transpose(wk, (1, 0, 2)).reshape(C, H * D)
    wv_c = jnp.transpose(wv, (1, 0, 2)).reshape(C, H * D)

    itemsize = jnp.dtype(x.dtype).itemsize
    flops = B * (4 * 2 * T * C * C          # QKV + projection matmuls
                 + H * (2 * T * T * D       # Q @ K^T per head
                        + 2 * T * T * D))   # P @ V per head
    transcendentals = B * H * T * T          # exp in softmax
    bytes_accessed = (x.size + 4 * C * C + C + B * T * C) * itemsize

    kernel = functools.partial(_fused_mha_kernel,
                               num_heads=H, head_size=D, scale=scale)

    return pl.pallas_call(
        kernel,
        out_shape=jax.ShapeDtypeStruct((B, T, C), x.dtype),
        grid_spec=pltpu.PrefetchScalarGridSpec(
            num_scalar_prefetch=0,
            grid=(B,),
            in_specs=[
                pl.BlockSpec((1, T, C), lambda b: (b, 0, 0)),   # x
                pl.BlockSpec((C, C), lambda b: (0, 0)),         # wq (resident)
                pl.BlockSpec((C, C), lambda b: (0, 0)),         # wk (resident)
                pl.BlockSpec((C, C), lambda b: (0, 0)),         # wv (resident)
                pl.BlockSpec((C, C), lambda b: (0, 0)),         # w_proj (resident)
                pl.BlockSpec((1, C), lambda b: (0, 0)),         # b_proj (resident)
            ],
            out_specs=pl.BlockSpec((1, T, C), lambda b: (b, 0, 0)),
        ),
        compiler_params=pltpu.CompilerParams(
            dimension_semantics=("parallel",)),
        cost_estimate=pl.CostEstimate(
            flops=flops,
            transcendentals=transcendentals,
            bytes_accessed=bytes_accessed),
    )(x, wq_c, wk_c, wv_c, w_proj, b_proj)


# ----------------------------------------------------------------------------
# Pure-JAX reference (mirrors the PyTorch forward in eval mode)
# ----------------------------------------------------------------------------
def _reference(x, wq, wk, wv, w_proj, b_proj):
    B, T, C = x.shape
    H, _, D = wq.shape
    scale = float(C) ** -0.5
    q = jnp.einsum("btc,hcd->bhtd", x, wq)
    k = jnp.einsum("btc,hcd->bhtd", x, wk)
    v = jnp.einsum("btc,hcd->bhtd", x, wv)
    s = jnp.einsum("bhtd,bhsd->bhts", q, k) * scale
    mask = jnp.tril(jnp.ones((T, T), dtype=bool))
    s = jnp.where(mask, s, -jnp.inf)
    p = jax.nn.softmax(s, axis=-1)
    o = jnp.einsum("bhts,bhsd->bhtd", p, v)
    o = jnp.transpose(o, (0, 2, 1, 3)).reshape(B, T, C)
    return o @ w_proj + b_proj


if __name__ == "__main__":
    # small, module-consistent shapes: num_heads=4, head_size=8, n_embed=32,
    # block_size=16, seq len T=8 (<= block_size), batch B=2.
    B, T = 2, 8
    num_heads, head_size = 4, 8
    n_embed = num_heads * head_size          # 32
    block_size = 16                          # only tril[:T, :T] is used

    key = jax.random.PRNGKey(0)
    kx, kq, kk, kv, kp, kb = jax.random.split(key, 6)

    x = jax.random.normal(kx, (B, T, n_embed), dtype=jnp.float32)

    # deterministic parameter init (shapes from the module's __init__)
    init = 0.02
    wq = init * jax.random.normal(kq, (num_heads, n_embed, head_size), jnp.float32)
    wk = init * jax.random.normal(kk, (num_heads, n_embed, head_size), jnp.float32)
    wv = init * jax.random.normal(kv, (num_heads, n_embed, head_size), jnp.float32)
    w_proj = init * jax.random.normal(kp, (n_embed, n_embed), jnp.float32)
    b_proj = init * jax.random.normal(kb, (1, n_embed), jnp.float32)

    out = multi_head_attention(x, wq, wk, wv, w_proj, b_proj)
    out = jax.block_until_ready(out)

    ref = _reference(x, wq, wk, wv, w_proj, b_proj)
    assert out.shape == (B, T, n_embed)
    # tolerance accounts for the approx (EUP) reciprocal in the softmax
    assert jnp.allclose(out, ref, atol=1e-4, rtol=1e-3), "mismatch vs reference"

    print("KERNEL_OK")
</pallas_src>

<mosaic_0001>
module attributes {stable_mosaic.version = 11 : i64} {
  func.func @_fused_mha_kernel(%arg0: i32, %arg1: memref<1x8x32xf32, #tpu.memory_space<vmem>>, %arg2: memref<32x32xf32, #tpu.memory_space<vmem>>, %arg3: memref<32x32xf32, #tpu.memory_space<vmem>>, %arg4: memref<32x32xf32, #tpu.memory_space<vmem>>, %arg5: memref<32x32xf32, #tpu.memory_space<vmem>>, %arg6: memref<1x32xf32, #tpu.memory_space<vmem>>, %arg7: memref<1x8x32xf32, #tpu.memory_space<vmem>>) attributes {dimension_semantics = [#tpu.dimension_semantics<parallel>], iteration_bounds = array<i64: 2>, scalar_prefetch = 0 : i64, scratch_operands = 0 : i64, tpu.core_type = #tpu.core_type<tc>, window_params = [{transform_indices = @transform_0, window_bounds = array<i64: 1, 8, 32>}, {pipeline_mode = #tpu.pipeline_mode<synchronous>, transform_indices = @transform_1, window_bounds = array<i64: 32, 32>}, {pipeline_mode = #tpu.pipeline_mode<synchronous>, transform_indices = @transform_2, window_bounds = array<i64: 32, 32>}, {pipeline_mode = #tpu.pipeline_mode<synchronous>, transform_indices = @transform_3, window_bounds = array<i64: 32, 32>}, {pipeline_mode = #tpu.pipeline_mode<synchronous>, transform_indices = @transform_4, window_bounds = array<i64: 32, 32>}, {pipeline_mode = #tpu.pipeline_mode<synchronous>, transform_indices = @transform_5, window_bounds = array<i64: 1, 32>}, {transform_indices = @transform_6, window_bounds = array<i64: 1, 8, 32>}]} {
    %c0 = arith.constant 0 : index
    %c0_0 = arith.constant 0 : index
    %c0_1 = arith.constant 0 : index
    %0 = vector.load %arg1[%c0, %c0_0, %c0_1] : memref<1x8x32xf32, #tpu.memory_space<vmem>>, vector<1x8x32xf32>
    %1 = vector.shape_cast %0 : vector<1x8x32xf32> to vector<8x32xf32>
    %c0_2 = arith.constant 0 : index
    %c0_3 = arith.constant 0 : index
    %2 = vector.load %arg2[%c0_2, %c0_3] : memref<32x32xf32, #tpu.memory_space<vmem>>, vector<32x32xf32>
    %cst = arith.constant dense<0.000000e+00> : vector<8x32xf32>
    %3 = tpu.matmul %1, %2, %cst {dimension_numbers = #tpu.dot_dimension_numbers<[1], [0], [0], [1], [0, 0, 1, 1], [], []>} : vector<8x32xf32>, vector<32x32xf32>, vector<8x32xf32> -> vector<8x32xf32>
    %c0_4 = arith.constant 0 : index
    %c0_5 = arith.constant 0 : index
    %4 = vector.load %arg3[%c0_4, %c0_5] : memref<32x32xf32, #tpu.memory_space<vmem>>, vector<32x32xf32>
    %cst_6 = arith.constant dense<0.000000e+00> : vector<8x32xf32>
    %5 = tpu.matmul %1, %4, %cst_6 {dimension_numbers = #tpu.dot_dimension_numbers<[1], [0], [0], [1], [0, 0, 1, 1], [], []>} : vector<8x32xf32>, vector<32x32xf32>, vector<8x32xf32> -> vector<8x32xf32>
    %c0_7 = arith.constant 0 : index
    %c0_8 = arith.constant 0 : index
    %6 = vector.load %arg4[%c0_7, %c0_8] : memref<32x32xf32, #tpu.memory_space<vmem>>, vector<32x32xf32>
    %cst_9 = arith.constant dense<0.000000e+00> : vector<8x32xf32>
    %7 = tpu.matmul %1, %6, %cst_9 {dimension_numbers = #tpu.dot_dimension_numbers<[1], [0], [0], [1], [0, 0, 1, 1], [], []>} : vector<8x32xf32>, vector<32x32xf32>, vector<8x32xf32> -> vector<8x32xf32>
    %8 = tpu.iota {dimensions = array<i32: 0>} : vector<8x8xi32>
    %9 = tpu.iota {dimensions = array<i32: 1>} : vector<8x8xi32>
    %10 = arith.cmpi sle, %9, %8 : vector<8x8xi32>
    %11 = vector.extract_strided_slice %3 {offsets = [0, 0], sizes = [8, 8], strides = [1, 1]} : vector<8x32xf32> to vector<8x8xf32>
    %12 = vector.extract_strided_slice %5 {offsets = [0, 0], sizes = [8, 8], strides = [1, 1]} : vector<8x32xf32> to vector<8x8xf32>
    %13 = vector.extract_strided_slice %7 {offsets = [0, 0], sizes = [8, 8], strides = [1, 1]} : vector<8x32xf32> to vector<8x8xf32>
    %14 = tpu.transpose %12, [1, 0] : vector<8x8xf32> -> vector<8x8xf32>
    %cst_10 = arith.constant dense<0.000000e+00> : vector<8x8xf32>
    %15 = tpu.matmul %11, %14, %cst_10 {dimension_numbers = #tpu.dot_dimension_numbers<[1], [0], [0], [1], [0, 0, 1, 1], [], []>} : vector<8x8xf32>, vector<8x8xf32>, vector<8x8xf32> -> vector<8x8xf32>
    %cst_11 = arith.constant 0.176776692 : f32
    %16 = vector.broadcast %cst_11 : f32 to vector<8x8xf32>
    %17 = arith.mulf %15, %16 : vector<8x8xf32>
    %cst_12 = arith.constant 0xFF800000 : f32
    %18 = vector.broadcast %cst_12 : f32 to vector<8x8xf32>
    %19 = arith.select %10, %17, %18 : vector<8x8xi1>, vector<8x8xf32>
    %cst_13 = arith.constant dense<0xFF800000> : vector<8xf32>
    %20 = vector.multi_reduction <maximumf>, %19, %cst_13 [1] : vector<8x8xf32> to vector<8xf32>
    %21 = vector.shape_cast %20 : vector<8xf32> to vector<8x1xf32>
    %22 = vector.broadcast %21 : vector<8x1xf32> to vector<8x8xf32>
    %23 = arith.subf %19, %22 : vector<8x8xf32>
    %24 = math.exp %23 : vector<8x8xf32>
    %cst_14 = arith.constant dense<0.000000e+00> : vector<8xf32>
    %25 = vector.multi_reduction <add>, %24, %cst_14 [1] : vector<8x8xf32> to vector<8xf32>
    %26 = vector.shape_cast %25 : vector<8xf32> to vector<8x1xf32>
    %27 = tpu.reciprocal %26 {approx = true} : vector<8x1xf32> -> vector<8x1xf32>
    %28 = vector.broadcast %27 : vector<8x1xf32> to vector<8x8xf32>
    %29 = arith.mulf %24, %28 : vector<8x8xf32>
    %cst_15 = arith.constant dense<0.000000e+00> : vector<8x8xf32>
    %30 = tpu.matmul %29, %13, %cst_15 {dimension_numbers = #tpu.dot_dimension_numbers<[1], [0], [0], [1], [0, 0, 1, 1], [], []>} : vector<8x8xf32>, vector<8x8xf32>, vector<8x8xf32> -> vector<8x8xf32>
    %31 = vector.extract_strided_slice %3 {offsets = [0, 8], sizes = [8, 8], strides = [1, 1]} : vector<8x32xf32> to vector<8x8xf32>
    %32 = vector.extract_strided_slice %5 {offsets = [0, 8], sizes = [8, 8], strides = [1, 1]} : vector<8x32xf32> to vector<8x8xf32>
    %33 = vector.extract_strided_slice %7 {offsets = [0, 8], sizes = [8, 8], strides = [1, 1]} : vector<8x32xf32> to vector<8x8xf32>
    %34 = tpu.transpose %32, [1, 0] : vector<8x8xf32> -> vector<8x8xf32>
    %cst_16 = arith.constant dense<0.000000e+00> : vector<8x8xf32>
    %35 = tpu.matmul %31, %34, %cst_16 {dimension_numbers = #tpu.dot_dimension_numbers<[1], [0], [0], [1], [0, 0, 1, 1], [], []>} : vector<8x8xf32>, vector<8x8xf32>, vector<8x8xf32> -> vector<8x8xf32>
    %cst_17 = arith.constant 0.176776692 : f32
    %36 = vector.broadcast %cst_17 : f32 to vector<8x8xf32>
    %37 = arith.mulf %35, %36 : vector<8x8xf32>
    %cst_18 = arith.constant 0xFF800000 : f32
    %38 = vector.broadcast %cst_18 : f32 to vector<8x8xf32>
    %39 = arith.select %10, %37, %38 : vector<8x8xi1>, vector<8x8xf32>
    %cst_19 = arith.constant dense<0xFF800000> : vector<8xf32>
    %40 = vector.multi_reduction <maximumf>, %39, %cst_19 [1] : vector<8x8xf32> to vector<8xf32>
    %41 = vector.shape_cast %40 : vector<8xf32> to vector<8x1xf32>
    %42 = vector.broadcast %41 : vector<8x1xf32> to vector<8x8xf32>
    %43 = arith.subf %39, %42 : vector<8x8xf32>
    %44 = math.exp %43 : vector<8x8xf32>
    %cst_20 = arith.constant dense<0.000000e+00> : vector<8xf32>
    %45 = vector.multi_reduction <add>, %44, %cst_20 [1] : vector<8x8xf32> to vector<8xf32>
    %46 = vector.shape_cast %45 : vector<8xf32> to vector<8x1xf32>
    %47 = tpu.reciprocal %46 {approx = true} : vector<8x1xf32> -> vector<8x1xf32>
    %48 = vector.broadcast %47 : vector<8x1xf32> to vector<8x8xf32>
    %49 = arith.mulf %44, %48 : vector<8x8xf32>
    %cst_21 = arith.constant dense<0.000000e+00> : vector<8x8xf32>
    %50 = tpu.matmul %49, %33, %cst_21 {dimension_numbers = #tpu.dot_dimension_numbers<[1], [0], [0], [1], [0, 0, 1, 1], [], []>} : vector<8x8xf32>, vector<8x8xf32>, vector<8x8xf32> -> vector<8x8xf32>
    %51 = vector.extract_strided_slice %3 {offsets = [0, 16], sizes = [8, 8], strides = [1, 1]} : vector<8x32xf32> to vector<8x8xf32>
    %52 = vector.extract_strided_slice %5 {offsets = [0, 16], sizes = [8, 8], strides = [1, 1]} : vector<8x32xf32> to vector<8x8xf32>
    %53 = vector.extract_strided_slice %7 {offsets = [0, 16], sizes = [8, 8], strides = [1, 1]} : vector<8x32xf32> to vector<8x8xf32>
    %54 = tpu.transpose %52, [1, 0] : vector<8x8xf32> -> vector<8x8xf32>
    %cst_22 = arith.constant dense<0.000000e+00> : vector<8x8xf32>
    %55 = tpu.matmul %51, %54, %cst_22 {dimension_numbers = #tpu.dot_dimension_numbers<[1], [0], [0], [1], [0, 0, 1, 1], [], []>} : vector<8x8xf32>, vector<8x8xf32>, vector<8x8xf32> -> vector<8x8xf32>
    %cst_23 = arith.constant 0.176776692 : f32
    %56 = vector.broadcast %cst_23 : f32 to vector<8x8xf32>
    %57 = arith.mulf %55, %56 : vector<8x8xf32>
    %cst_24 = arith.constant 0xFF800000 : f32
    %58 = vector.broadcast %cst_24 : f32 to vector<8x8xf32>
    %59 = arith.select %10, %57, %58 : vector<8x8xi1>, vector<8x8xf32>
    %cst_25 = arith.constant dense<0xFF800000> : vector<8xf32>
    %60 = vector.multi_reduction <maximumf>, %59, %cst_25 [1] : vector<8x8xf32> to vector<8xf32>
    %61 = vector.shape_cast %60 : vector<8xf32> to vector<8x1xf32>
    %62 = vector.broadcast %61 : vector<8x1xf32> to vector<8x8xf32>
    %63 = arith.subf %59, %62 : vector<8x8xf32>
    %64 = math.exp %63 : vector<8x8xf32>
    %cst_26 = arith.constant dense<0.000000e+00> : vector<8xf32>
    %65 = vector.multi_reduction <add>, %64, %cst_26 [1] : vector<8x8xf32> to vector<8xf32>
    %66 = vector.shape_cast %65 : vector<8xf32> to vector<8x1xf32>
    %67 = tpu.reciprocal %66 {approx = true} : vector<8x1xf32> -> vector<8x1xf32>
    %68 = vector.broadcast %67 : vector<8x1xf32> to vector<8x8xf32>
    %69 = arith.mulf %64, %68 : vector<8x8xf32>
    %cst_27 = arith.constant dense<0.000000e+00> : vector<8x8xf32>
    %70 = tpu.matmul %69, %53, %cst_27 {dimension_numbers = #tpu.dot_dimension_numbers<[1], [0], [0], [1], [0, 0, 1, 1], [], []>} : vector<8x8xf32>, vector<8x8xf32>, vector<8x8xf32> -> vector<8x8xf32>
    %71 = vector.extract_strided_slice %3 {offsets = [0, 24], sizes = [8, 8], strides = [1, 1]} : vector<8x32xf32> to vector<8x8xf32>
    %72 = vector.extract_strided_slice %5 {offsets = [0, 24], sizes = [8, 8], strides = [1, 1]} : vector<8x32xf32> to vector<8x8xf32>
    %73 = vector.extract_strided_slice %7 {offsets = [0, 24], sizes = [8, 8], strides = [1, 1]} : vector<8x32xf32> to vector<8x8xf32>
    %74 = tpu.transpose %72, [1, 0] : vector<8x8xf32> -> vector<8x8xf32>
    %cst_28 = arith.constant dense<0.000000e+00> : vector<8x8xf32>
    %75 = tpu.matmul %71, %74, %cst_28 {dimension_numbers = #tpu.dot_dimension_numbers<[1], [0], [0], [1], [0, 0, 1, 1], [], []>} : vector<8x8xf32>, vector<8x8xf32>, vector<8x8xf32> -> vector<8x8xf32>
    %cst_29 = arith.constant 0.176776692 : f32
    %76 = vector.broadcast %cst_29 : f32 to vector<8x8xf32>
    %77 = arith.mulf %75, %76 : vector<8x8xf32>
    %cst_30 = arith.constant 0xFF800000 : f32
    %78 = vector.broadcast %cst_30 : f32 to vector<8x8xf32>
    %79 = arith.select %10, %77, %78 : vector<8x8xi1>, vector<8x8xf32>
    %cst_31 = arith.constant dense<0xFF800000> : vector<8xf32>
    %80 = vector.multi_reduction <maximumf>, %79, %cst_31 [1] : vector<8x8xf32> to vector<8xf32>
    %81 = vector.shape_cast %80 : vector<8xf32> to vector<8x1xf32>
    %82 = vector.broadcast %81 : vector<8x1xf32> to vector<8x8xf32>
    %83 = arith.subf %79, %82 : vector<8x8xf32>
    %84 = math.exp %83 : vector<8x8xf32>
    %cst_32 = arith.constant dense<0.000000e+00> : vector<8xf32>
    %85 = vector.multi_reduction <add>, %84, %cst_32 [1] : vector<8x8xf32> to vector<8xf32>
    %86 = vector.shape_cast %85 : vector<8xf32> to vector<8x1xf32>
    %87 = tpu.reciprocal %86 {approx = true} : vector<8x1xf32> -> vector<8x1xf32>
    %88 = vector.broadcast %87 : vector<8x1xf32> to vector<8x8xf32>
    %89 = arith.mulf %84, %88 : vector<8x8xf32>
    %cst_33 = arith.constant dense<0.000000e+00> : vector<8x8xf32>
    %90 = tpu.matmul %89, %73, %cst_33 {dimension_numbers = #tpu.dot_dimension_numbers<[1], [0], [0], [1], [0, 0, 1, 1], [], []>} : vector<8x8xf32>, vector<8x8xf32>, vector<8x8xf32> -> vector<8x8xf32>
    %91 = tpu.concatenate %30, %50, %70, %90 in 1 : vector<8x8xf32>, vector<8x8xf32>, vector<8x8xf32>, vector<8x8xf32> -> vector<8x32xf32>
    %c0_34 = arith.constant 0 : index
    %c0_35 = arith.constant 0 : index
    %92 = vector.load %arg5[%c0_34, %c0_35] : memref<32x32xf32, #tpu.memory_space<vmem>>, vector<32x32xf32>
    %cst_36 = arith.constant dense<0.000000e+00> : vector<8x32xf32>
    %93 = tpu.matmul %91, %92, %cst_36 {dimension_numbers = #tpu.dot_dimension_numbers<[1], [0], [0], [1], [0, 0, 1, 1], [], []>} : vector<8x32xf32>, vector<32x32xf32>, vector<8x32xf32> -> vector<8x32xf32>
    %c0_37 = arith.constant 0 : index
    %c0_38 = arith.constant 0 : index
    %94 = vector.load %arg6[%c0_37, %c0_38] : memref<1x32xf32, #tpu.memory_space<vmem>>, vector<1x32xf32>
    %95 = vector.broadcast %94 : vector<1x32xf32> to vector<8x32xf32>
    %96 = arith.addf %93, %95 : vector<8x32xf32>
    %c0_39 = arith.constant 0 : index
    %c0_40 = arith.constant 0 : index
    %c0_41 = arith.constant 0 : index
    %97 = vector.load %arg7[%c0_39, %c0_40, %c0_41] : memref<1x8x32xf32, #tpu.memory_space<vmem>>, vector<1x8x32xf32>
    %98 = vector.shape_cast %97 : vector<1x8x32xf32> to vector<8x32xf32>
    %99 = vector.shape_cast %96 : vector<8x32xf32> to vector<1x8x32xf32>
    tpu.vector_store %arg7[%c0_39, %c0_40, %c0_41], %99 {strides = array<i32>} : memref<1x8x32xf32, #tpu.memory_space<vmem>>, vector<1x8x32xf32>,
    return
  }
  func.func @transform_0(%arg0: i32) -> (i32, i32, i32) {
    %c0_i32 = arith.constant 0 : i32
    %c0_i32_0 = arith.constant 0 : i32
    %c0_i32_1 = arith.constant 0 : i32
    return %arg0, %c0_i32, %c0_i32_0 : i32, i32, i32
  }
  func.func @transform_1(%arg0: i32) -> (i32, i32) {
    %c0_i32 = arith.constant 0 : i32
    %c0_i32_0 = arith.constant 0 : i32
    %c0_i32_1 = arith.constant 0 : i32
    return %c0_i32, %c0_i32_0 : i32, i32
  }
  func.func @transform_2(%arg0: i32) -> (i32, i32) {
    %c0_i32 = arith.constant 0 : i32
    %c0_i32_0 = arith.constant 0 : i32
    %c0_i32_1 = arith.constant 0 : i32
    return %c0_i32, %c0_i32_0 : i32, i32
  }
  func.func @transform_3(%arg0: i32) -> (i32, i32) {
    %c0_i32 = arith.constant 0 : i32
    %c0_i32_0 = arith.constant 0 : i32
    %c0_i32_1 = arith.constant 0 : i32
    return %c0_i32, %c0_i32_0 : i32, i32
  }
  func.func @transform_4(%arg0: i32) -> (i32, i32) {
    %c0_i32 = arith.constant 0 : i32
    %c0_i32_0 = arith.constant 0 : i32
    %c0_i32_1 = arith.constant 0 : i32
    return %c0_i32, %c0_i32_0 : i32, i32
  }
  func.func @transform_5(%arg0: i32) -> (i32, i32) {
    %c0_i32 = arith.constant 0 : i32
    %c0_i32_0 = arith.constant 0 : i32
    %c0_i32_1 = arith.constant 0 : i32
    return %c0_i32, %c0_i32_0 : i32, i32
  }
  func.func @transform_6(%arg0: i32) -> (i32, i32, i32) {
    %c0_i32 = arith.constant 0 : i32
    %c0_i32_0 = arith.constant 0 : i32
    %c0_i32_1 = arith.constant 0 : i32
    return %arg0, %c0_i32, %c0_i32_0 : i32, i32, i32
  }
}

</mosaic_0001>

<bundles_post_ra>
// kernel: tpu_custom_call.1
= control target key start
LH: loop header
LB: loop body
LE: loop exit
PB: predicated region body
PF: predicated region fallthrough
CT: control target
= control target key end

     0   :  { %11 = vsyncpa [#allocation3], 0  ;;  %s2408_s0 = inlined_call_operand.hbm [shape: f32[2,8,32], index: 0, kind: input, shape index: {}]   ;;  %s2409_s1 = inlined_call_operand.hbm [shape: f32[32,32], index: 1, kind: input, shape index: {}]   ;;  %s2410_s2 = inlined_call_operand.hbm [shape: f32[32,32], index: 2, kind: input, shape index: {}]   ;;  %s2411_s3 = inlined_call_operand.hbm [shape: f32[32,32], index: 3, kind: input, shape index: {}]   ;;  %s2412_s4 = inlined_call_operand.hbm [shape: f32[32,32], index: 4, kind: input, shape index: {}]   ;;  %s2413_s5 = inlined_call_operand.vmem [shape: f32[1,32], index: 5, kind: input, shape index: {}]   ;;  %s2414_s6 = inlined_call_operand.hbm [shape: f32[2,8,32], index: 6, kind: output, shape index: {}]  }
   0x1   :  { %13 = vsyncpa [#allocation3 + $0x1], 0 }
   0x2   :  { %14 = vsyncpa [#allocation6], 0 }
   0x3   :  { %15 = vsyncpa [#allocation9], 0 }
   0x4   :  { %16 = vsyncpa [#allocation4], 0 }
   0x5   :  { %18 = vsyncpa [#allocation4 + $0x1], 0  ;;  %s2011_s21 = smov 0   ;;  %s2013_s22 = smov 0  }
   0x6   :  { %s2015_s23 = smov 0   ;;  %s2017_s24 = smov 0  }
   0x7 LB: > { %s1959_s25 = smov [#allocation5]   ;;  %s2032_s27 = sadd.s32 4294967295, %s1957_s24   ;;  %s1957_s24 = sphi %s2017_s24, %s2438_s24   ;;  %s1953_s23 = sphi %s2015_s23, %s2437_s23   ;;  %s1949_s22 = sphi %s2013_s22, %s2436_s22   ;;  %s1945_s21 = sphi %s2011_s21, %s2435_s21  }
   0x8   : > { %s198_s26 = sshll.u32 %s1959_s25, 4  ;;  %p1447_p0 = scmp.ge.s32.totalorder %s1957_s24, 1  ;;  %s2037_s26 = int_to_ptr.vmem [resolvable:$true] %s198_s26 }
   0x9   : > { %p2415_p1 = scmp.eq.s32.totalorder %s2032_s27, 0  ;;  %p186_p2 = scmp.lt.s32.totalorder %s1957_s24, 3 }
   0xa   : > { %s1960_s29 = smov [#allocation8]   ;;  %s1961_s8 = smov [#allocation7]  }
   0xb   : > { %p2039_p3 = pnand %p1447_p0, %p186_p2  ;;  %s224_s30 = sshll.u32 %s1960_s29, 4  ;;  %s2052_s30 = int_to_ptr.vmem [resolvable:$true] %s224_s30 }
   0xc   : > { %s211_s9 = sshll.u32 %s1961_s8, 4  ;;  %s1741_s12 = scalar_lea.hbm %s2409_s1, 512  ;;  %s2054_s9 = int_to_ptr.vmem [resolvable:$true] %s211_s9 }
   0xd   : > { %s2418_s28 = scalar_select %p2039_p3, 1, 0 }
   0xe   : > { %p1647_p5 = pneg %p2039_p3  ;;  %p1742_p7 = scmp.ne.s32.totalorder %s2409_s1, %s1741_s12 }
   0xf   : > { %p1748_p11 = scmp.lt.u32.totalorder %s1741_s12, %s2409_s1 }
  0x10   : > { %p2048_p6 = pnand %p1647_p5, %p2415_p1 }
  0x12   : > { %p2064_p8 = pneg %p2048_p6 }
  0x14   : > { %p1744_p9 = pnand %p2064_p8, %p1742_p7 }
  0x16   : > { %p1745_p10 = pneg %p1744_p9 }
  0x18   : > { %p1750_p12 = pnand %p1748_p11, %p1745_p10 }
  0x1a   : > { %1753 = shalt.err (!%p1750_p12)
}
  0x1b   : > { %s1754_s18 = scalar_lea.vmem %s2037_s26, 512  ;;  %p1762_p5 = scmp.lt.s32.totalorder %s2037_s26, %s2037_s26 }
  0x1c   : > { %p1755_p13 = scmp.ne.s32.totalorder %s2037_s26, %s1754_s18  ;;  %p1763_p4 = scmp.lt.s32.totalorder %s1754_s18, %s1754_s18 }
  0x1e   : > { %p1757_p0 = pnand %p1755_p13, %p2064_p8  ;;  %p1764_p7 = por %p1763_p4, %p1762_p5 }
  0x20   : > { %p1758_p2 = pneg %p1757_p0 }
  0x22   : > { %p1765_p9 = pnand %p1764_p7, %p1758_p2 }
  0x24   : > { %1768 = shalt.err (!%p1765_p9)
}
  0x25   : > { %s1962_s19 = smov 128   ;;  %s1963_s20 = smov 8  }
  0x26   : > { %1650 = dma.hbm_to_vmem [thread:$0]  (!%p2048_p6), %s2409_s1, 512, %s2037_s26, [#allocation6], %s1962_s19, %s1962_s19, %s1963_s20  }
  0x27   : > { %s1769_s11 = scalar_lea.hbm %s2411_s3, 512 }
  0x28   : > { %p1770_p4 = scmp.ne.s32.totalorder %s2411_s3, %s1769_s11  ;;  %p1776_p12 = scmp.lt.u32.totalorder %s1769_s11, %s2411_s3 }
  0x2a   : > { %p1772_p10 = pnand %p1770_p4, %p2064_p8 }
  0x2c   : > { %p1773_p11 = pneg %p1772_p10 }
  0x2e   : > { %p1778_p13 = pnand %p1776_p12, %p1773_p11 }
  0x30   : > { %1781 = shalt.err (!%p1778_p13)
}
  0x31   : > { %s1782_s26 = scalar_lea.vmem %s2052_s30, 512  ;;  %p1790_p7 = scmp.lt.s32.totalorder %s2052_s30, %s2052_s30 }
  0x32   : > { %p1783_p0 = scmp.ne.s32.totalorder %s2052_s30, %s1782_s26  ;;  %p1791_p9 = scmp.lt.s32.totalorder %s1782_s26, %s1782_s26 }
  0x34   : > { %p1785_p2 = pnand %p1783_p0, %p2064_p8  ;;  %p1792_p4 = por %p1791_p9, %p1790_p7 }
  0x36   : > { %p1786_p5 = pneg %p1785_p2 }
  0x38   : > { %p1793_p10 = pnand %p1792_p4, %p1786_p5 }
  0x3a   : > { %1796 = shalt.err (!%p1793_p10)
}
  0x3b   : > { %1656 = dma.hbm_to_vmem [thread:$0]  (!%p2048_p6), %s2411_s3, 512, %s2052_s30, [#allocation9], %s1962_s19, %s1962_s19, %s1963_s20  }
  0x3c   : > { %s1797_s8 = scalar_lea.hbm %s2410_s2, 512 }
  0x3d   : > { %p1798_p11 = scmp.ne.s32.totalorder %s2410_s2, %s1797_s8  ;;  %p1804_p0 = scmp.lt.u32.totalorder %s1797_s8, %s2410_s2 }
  0x3f   : > { %p1800_p12 = pnand %p1798_p11, %p2064_p8 }
  0x41   : > { %p1801_p13 = pneg %p1800_p12 }
  0x43   : > { %p1806_p2 = pnand %p1804_p0, %p1801_p13 }
  0x45   : > { %1809 = shalt.err (!%p1806_p2)
}
  0x46   : > { %s1810_s30 = scalar_lea.vmem %s2054_s9, 512  ;;  %p1818_p4 = scmp.lt.s32.totalorder %s2054_s9, %s2054_s9 }
  0x47   : > { %p1811_p5 = scmp.ne.s32.totalorder %s2054_s9, %s1810_s30  ;;  %p1819_p10 = scmp.lt.s32.totalorder %s1810_s30, %s1810_s30 }
  0x49   : > { %p1813_p7 = pnand %p1811_p5, %p2064_p8  ;;  %p1820_p11 = por %p1819_p10, %p1818_p4 }
  0x4b   : > { %p1814_p9 = pneg %p1813_p7 }
  0x4d   : > { %p1821_p12 = pnand %p1820_p11, %p1814_p9 }
  0x4f   : > { %1824 = shalt.err (!%p1821_p12)
}
  0x50   : > { %1653 = dma.hbm_to_vmem [thread:$0]  (!%p2048_p6), %s2410_s2, 512, %s2054_s9, [#allocation6], %s1962_s19, %s1962_s19, %s1963_s20  }
  0x51   : > { %s1964_s26 = smov [#allocation10]   ;;  %s1825_s29 = scalar_lea.hbm %s2412_s4, 512 }
  0x52   : > { %s237_s17 = sshll.u32 %s1964_s26, 4  ;;  %p1826_p13 = scmp.ne.s32.totalorder %s2412_s4, %s1825_s29  ;;  %s238_s17 = int_to_ptr.vmem [resolvable:$true] %s237_s17 }
  0x53   : > { %p1832_p5 = scmp.lt.u32.totalorder %s1825_s29, %s2412_s4 }
  0x54   : > { %p1828_p0 = pnand %p1826_p13, %p2064_p8 }
  0x56   : > { %p1829_p2 = pneg %p1828_p0 }
  0x58   : > { %p1834_p7 = pnand %p1832_p5, %p1829_p2 }
  0x5a   : > { %1837 = shalt.err (!%p1834_p7)
}
  0x5b   : > { %s1838_s9 = scalar_lea.vmem %s238_s17, 512  ;;  %p1846_p11 = scmp.lt.s32.totalorder %s238_s17, %s238_s17 }
  0x5c   : > { %p1839_p9 = scmp.ne.s32.totalorder %s238_s17, %s1838_s9  ;;  %p1847_p12 = scmp.lt.s32.totalorder %s1838_s9, %s1838_s9 }
  0x5e   : > { %p1841_p4 = pnand %p1839_p9, %p2064_p8  ;;  %p1848_p1 = por %p1847_p12, %p1846_p11 }
  0x60   : > { %p1842_p10 = pneg %p1841_p4 }
  0x62   : > { %p1849_p3 = pnand %p1848_p1, %p1842_p10 }
  0x64   : > { %1852 = shalt.err (!%p1849_p3)
}
  0x65   : > { %1659 = dma.hbm_to_vmem [thread:$0]  (!%p2048_p6), %s2412_s4, 512, %s238_s17, [#allocation9], %s1962_s19, %s1962_s19, %s1963_s20  }
  0x66   : > { %s1446_s7 = sadd.s32 4294967294, %s1957_s24   ;;  %s2163_s15 = sadd.s32 1, %s1957_s24  }
  0x67   : > { %s28_s14 = ssub.s32 %s1957_s24, %s2163_s15  ;;  %s31_s16 = sadd.s32 1, %s1953_s23 }
  0x68   : > { %p29_p1 = scmp.eq.s32.totalorder %s28_s14, 0  ;;  %p38_p3 = scmp.ne.s32.totalorder %s1953_s23, %s1949_s22 }
  0x69   : > { %p39_p8 = scmp.eq.s32.totalorder %s1957_s24, 0  ;;  %p44_p13 = scmp.ne.s32.totalorder %s1949_s22, %s1945_s21 }
  0x6a   : > { %s2174_s26 = scalar_select %p29_p1, %s1953_s23, %s31_s16  }
  0x6b   : > { %p2176_p0 = por %p39_p8, %p38_p3  ;;  %p2422_p2 = scmp.eq.s32.totalorder %s2032_s27, 0 }
  0x6c   : > { %p173_p5 = scmp.eq.s32.totalorder %s2032_s27, 1  ;;  %p179_p7 = scmp.eq.s32.totalorder %s1446_s7, 1 }
  0x6d   : > { %p2182_p6 = por %p2422_p2, %p44_p13  ;;  %p1672_p9 = scmp.lt.s32.totalorder %s1957_s24, 2 }
  0x6e   : > { %s254_s20 = sand.u32 1, %s1953_s23   ;;  %p2189_p4 = por %p173_p5, %p38_p3 }
  0x6f   : > { %p2193_p10 = por %p179_p7, %p44_p13  ;;  %s1453_s29 = sshll.u32 %s254_s20, 3 }
  0x70   : > { %s2424_s17 = scalar_select %p2189_p4, 1, 0 }
  0x71   : > { %s2425_s25 = scalar_select %p2193_p10, 1, 0 }
  0x72   : > { %s1454_s8 = sshll.u32 %s1957_s24, 7  ;;  %s258_s9 = scalar_lea.vmem [#allocation2], %s1453_s29 }
  0x73   : > { %s2201_s12 = scalar_lea.hbm %s2408_s0, %s1454_s8  ;;  %s265_s13 = sshll.u32 %s258_s9, 4  ;;  %s2203_s13 = int_to_ptr.vmem [resolvable:$true] %s265_s13 }
  0x74   : > { %p2207_p11 = pnand %p1672_p9, %p2176_p0  ;;  %s255_s7 = scalar_lea.sflag [#allocation3], %s254_s20 }
  0x75   : > { %s1853_s14 = scalar_lea.hbm %s2201_s12, 128  ;;  %s1858_s8 = scalar_lea.hbm %s2408_s0, 256 }
  0x76   : > { %p1854_p12 = scmp.ne.s32.totalorder %s2201_s12, %s1853_s14  ;;  %p1855_p1 = pneg %p2207_p11 }
  0x77   : > { %p1859_p13 = scmp.lt.u32.totalorder %s2201_s12, %s2408_s0  ;;  %p1860_p0 = scmp.lt.u32.totalorder %s1858_s8, %s1853_s14 }
  0x78   : > { %p1856_p3 = pnand %p1855_p1, %p1854_p12  ;;  %p1862_p5 = scmp.lt.u32.totalorder %s1853_s14, %s2201_s12 }
  0x79   : > { %p1861_p2 = por %p1860_p0, %p1859_p13 }
  0x7a   : > { %p1857_p8 = pneg %p1856_p3 }
  0x7b   : > { %p1863_p7 = por %p1862_p5, %p1861_p2 }
  0x7d   : > { %p1864_p9 = pnand %p1863_p7, %p1857_p8 }
  0x7f   : > { %1867 = shalt.err (!%p1864_p9)
}
  0x80   : > { %s1868_s20 = scalar_lea.vmem %s2203_s13, 128  ;;  %s1965_s11 = smov [#allocation2]  }
  0x81   : > { %p1869_p12 = scmp.ne.s32.totalorder %s2203_s13, %s1868_s20  ;;  %s1873_s9 = sshll.u32 %s1965_s11, 4  ;;  %s1874_s9 = int_to_ptr.vmem [resolvable:$false] %s1873_s9 }
  0x82   : > { %s1875_s16 = scalar_lea.vmem %s1874_s9, 256  ;;  %p1876_p4 = scmp.lt.s32.totalorder %s2203_s13, %s1874_s9 }
  0x83   : > { %p1871_p3 = pnand %p1869_p12, %p1855_p1  ;;  %p1877_p13 = scmp.lt.s32.totalorder %s1875_s16, %s1868_s20 }
  0x85   : > { %p1872_p10 = pneg %p1871_p3  ;;  %p1878_p0 = por %p1877_p13, %p1876_p4 }
  0x87   : > { %p1879_p2 = pnand %p1878_p0, %p1872_p10 }
  0x89   : > { %1882 = shalt.err (!%p1879_p2)
}
  0x8a   : > { %1663 = dma.hbm_to_vmem [thread:$0]  (!%p2207_p11), %s2201_s12, 128, %s2203_s13, %s255_s7  }
  0x8b   : > { %p2427_p8 = scmp.ne.s32.totalorder %s2418_s28, 0 }
  0x8c   : > { %s2239_s14 = sand.u32 (!%p2427_p8), 1, %s1949_s22  }
  0x8d   : > { %274 = sbr.rel (%p2427_p8) target bundleno = 2063 (0x80f), region = 44  ;;  %s1456_s29 = sshll.u32 (!%p2427_p8), %s2239_s14, 3 }
  0x8e   : > { %s277_s8 = scalar_lea.sflag (!%p2427_p8), [#allocation3], %s2239_s14  ;;  %s2245_s18 = scalar_lea.vmem (!%p2427_p8), [#allocation2], %s1456_s29 }
  0x94   : > { %1928 = dma.done.wait (%p2182_p6), %s277_s8, 128  }
  0x95   : > { %1930 = vsyncadd (%p2182_p6), %s277_s8, 4294967168  ;;  %p2428_p4 = scmp.eq.s32.totalorder %s2032_s27, 0 }
  0x97   : > { %1932 = dma.done.wait (%p2428_p4), [#allocation6], 1024   ;;  %p2429_p10 = pmov %p2428_p4 }
  0x98   : > { %p2430_p11 = pmov %p2428_p4 }
  0x99   : > { %1934 = vsyncadd (%p2429_p10), [#allocation6], 4294966272 }
  0x9a   : > { %1936 = dma.done.wait (%p2430_p11), [#allocation9], 1024   ;;  %p2431_p1 = pmov %p2428_p4 }
  0x9b   : > { %v1966_v0 = vmov 0.0|0.0   ;;  %vm1967_vm0 = vmmov 0   ;;  %v1968_v1 = vmov 0.0   ;;  %v404_v2 = vld [vmem:[#allocation7] sm:$0xff]  ;;  %v405_v3 = vld [vmem:[#allocation7 + $0x8] sm:$0xff]  ;;  %v406_v7 = vld [vmem:[#allocation7 + $0x10] sm:$0xff]  ;;  %v552_v25 = vlaneseq }
  0x9c   : > { %1938 = vsyncadd (%p2431_p1), [#allocation9], 4294966272  ;;  %1609 = vmatprep.subr.bf16.mxu1 %v1966_v0  ;;  %1603 = vmatprep.subr.bf16.mxu0 %v1966_v0  ;;  %v326_v4 = vld [vmem:[#allocation5] sm:$0xff]  ;;  %v1610_v5 = vpack.c.bf16 %v405_v3, %v404_v2  ;;  %v327_v6 = vld [vmem:[#allocation5 + $0x8] sm:$0xff]  ;;  %vm330_vm1 = vcmask 261120   ;;  %vm557_vm2 = vcmask 64512  }
  0x9d   : > { %1538 = vmatprep.mubr.msk.f32.mxu1 %vm1967_vm0, %v1968_v1  ;;  %1527 = vmatprep.mubr.msk.f32.mxu0 %vm1967_vm0, %v1968_v1  ;;  %v407_v8 = vld [vmem:[#allocation7 + $0x18] sm:$0xff]  ;;  %v1604_v9 = vpack.c.bf16 %v327_v6, %v326_v4  ;;  %v328_v10 = vld [vmem:[#allocation5 + $0x10] sm:$0xff]  ;;  %s1969_s28 = smov 120   ;;  %s1970_s19 = smov 112   ;;  %v478_v19 = vld [vmem:[#allocation8] sm:$0xff]  ;;  %v2291_v26 = vshrl.u32 %v552_v25, 7 }
  0x9e   : > { %v329_v11 = vld [vmem:[#allocation5 + $0x18] sm:$0xff]  ;;  %1611 = vmatpush3.bf16.msra.mxu1 %v1610_v5  ;;  %v1613_v12 = vpack.c.bf16 %v407_v8, %v406_v7  ;;  %s1971_s12 = smov 104   ;;  %v479_v20 = vld [vmem:[#allocation8 + $0x8] sm:$0xff]  ;;  %v480_v21 = vld [vmem:[#allocation8 + $0x10] sm:$0xff]  ;;  %v555_v27 = vand.u32 127, %v552_v25  ;;  %s1972_s13 = smov 8  }
  0x9f   : > { %1605 = vmatpush3.bf16.msra.mxu0 %v1604_v9  ;;  %1612 = vmatprep.subr.bf16.mxu1 %v1966_v0  ;;  %v1607_v13 = vpack.c.bf16 %v329_v11, %v328_v10  ;;  %v325_v14 = vld [vmem:[%s2245_s18] sm:$0xff]  ;;  %v1616_v22 = vpack.c.bf16 %v479_v20, %v478_v19  ;;  %s1973_s30 = smov 16   ;;  %s1974_s7 = smov 24   ;;  %vm1235_vm4 = vcmask 130048   ;;  %vm1237_vm5 = vcmask 195584  }
  0xa0   : > { %1606 = vmatprep.subr.bf16.mxu0 %v1966_v0  ;;  %v481_v23 = vld [vmem:[#allocation8 + $0x18] sm:$0xff]  ;;  %vm556_vm3 = vcmp.le.s32.totalorder %v555_v27, %v2291_v26  ;;  %s1480_s11 = sshll.u32 %s2032_s27, 7  ;;  %s324_s9 = scalar_lea.vmem [#allocation11], %s1456_s29 }
  0xa1   : > { %v1619_v24 = vpack.c.bf16 %v481_v23, %v480_v21  ;;  %s1338_s16 = sshll.u32 %s324_s9, 4  ;;  %p2432_p5 = scmp.ne.s32.totalorder %s2424_s17, 0  ;;  %s2365_s16 = int_to_ptr.vmem [resolvable:$true] %s1338_s16 }
  0xa2   : > { %1614 = vmatpush3.bf16.msra.mxu1 %v1613_v12  ;;  %s1883_s27 = scalar_lea.vmem %s2365_s16, 128  ;;  %s1975_s29 = smov [#allocation11]  }
  0xa3   : > { %1608 = vmatpush3.bf16.msra.mxu0 %v1607_v13  ;;  %1552 = vmatprep.subr.mxu1 %v1968_v1  ;;  %p1884_p6 = scmp.ne.s32.totalorder %s2365_s16, %s1883_s27 }
  0xa4   : > { %1615 = vmatprep.subr.bf16.mxu0 %v1966_v0 }
  0xa5   : > { %1539 = vmatmul.mubr.msk.f32.vlgmr.msra.gmra.mrb[0].mxu1 %vm330_vm1, %v325_v14  ;;  %p1885_p7 = pnand %p1884_p6, %p2432_p5 }
  0xa6   : > { %1528 = vmatmul.mubr.msk.f32.vlgmr.msra.gmra.mrb[0].mxu0 %vm330_vm1, %v325_v14  ;;  %1554 = vmatprep.mubr.msk.f32.mxu1 %vm1967_vm0, %v1968_v1 }
  0xa7   : > { %1549 = vmatprep.mubr.msk.f32.mxu0 %vm1967_vm0, %v1968_v1  ;;  %1617 = vmatpush3.bf16.msra.mxu0 %v1616_v22  ;;  %p1886_p9 = pneg %p1885_p7 }
  0xa8   : > { %1618 = vmatprep.subr.bf16.mxu0 %v1966_v0 }
  0xab   : > { %1620 = vmatpush3.bf16.msra.mxu0 %v1619_v24 }
  0xac   : > { %1572 = vmatprep.subr.mxu0 %v1968_v1 }
  0xae   : > { %1550 = vmatmul.mubr.msk.f32.vlgmr.msra.gmra.mrb[2].mxu0 %vm330_vm1, %v325_v14 }
  0xaf   : > { %1574 = vmatprep.mubr.msk.f32.mxu0 %vm1967_vm0, %v1968_v1 }
 0x178   : > { %v474_v15 = vpop.f32.mrb[0].mxu1 }
 0x179   : > { %722 = vrot.lane.b32.xlu1 %v474_v15, %s1969_s28  ;;  %v1540_v16 = vpop.f32.mrb[1].mxu1  ;;  %1553 = vmatpush3.xpose.msk.msra.mxu1 %vm557_vm2, %v474_v15  ;;  %v400_v17 = vpop.f32.mrb[0].mxu0 }
 0x17a   : > { %v1529_v18 = vpop.f32.mrb[1].mxu0  ;;  %1557 = vmatprep.subr.mxu1 %v1968_v1 }
 0x17c   : > { %1555 = vmatmul.mubr.msk.f32.vlgmr.msra.gmra.mrb[2].mxu1 %vm557_vm2, %v400_v17 }
 0x17d   : > { %720 = vrot.lane.b32.xlu1 %v400_v17, %s1969_s28  ;;  %1559 = vmatprep.mubr.msk.f32.mxu1 %vm1967_vm0, %v1968_v1 }
 0x181   : > { %888 = vrot.lane.b32.xlu1 %v400_v17, %s1970_s19  ;;  %v2298_v38 = vpop.f32.mrb[2].mxu0 }
 0x182   : > { %v1551_v39 = vpop.f32.mrb[3].mxu0  ;;  %1558 = vmatpush3.msra.mxu1 %v2298_v38 }
 0x183   : > { %1562 = vmatprep.subr.mxu1 %v1968_v1 }
 0x185   : > { %1057 = vrot.lane.b32.xlu1 %v474_v15, %s1971_s12 }
 0x189   : > { %1055 = vrot.lane.b32.xlu1 %v400_v17, %s1971_s12 }
 0x1eb   : > { %v723_v40 = vpop.permute.xlu1 %722 }
 0x1ef   : > { %v721_v41 = vpop.permute.xlu1 %720 }
 0x1f3   : > { %v889_v42 = vpop.permute.xlu1 %888 }
 0x1f7   : > { %v1058_v45 = vpop.permute.xlu1 %1057 }
 0x1fb   : > { %v1056_v47 = vpop.permute.xlu1 %1055 }
 0x24f   : > { %v630_v28 = vpop.f32.mrb[2].mxu1 }
 0x250   : > { %v634_v29 = vmul.f32 0.17677669, %v630_v28  ;;  %v1556_v30 = vpop.f32.mrb[3].mxu1 }
 0x252   : > { %v635_v31 = vsel %vm556_vm3, %v634_v29, -inf }
 0x253   : > { %v636_v32 = vsel %vm557_vm2, %v635_v31, -inf }
 0x254   : > { %637 = vmax.xlane.f32.xlu0 %v636_v32  ;;  %v1240_v32 = vld [vmem:[#allocation10 + $0x8] sm:$0xff] }
 0x2e1   : > { %v638_v33 = vpop.xlane.xlu0 %637 }
 0x2e2   : > { %v639_v34 = vsub.f32 %v635_v31, %v638_v33  ;;  %v1239_v31 = vld [vmem:[#allocation10] sm:$0xff] }
 0x2e3   : > { %v1622_v33 = vpack.c.bf16 %v1240_v32, %v1239_v31 }
 0x2e4   : > { %v640_v35 = vmul.f32 1.442695, %v639_v34  ;;  %v1241_v34 = vld [vmem:[#allocation10 + $0x10] sm:$0xff] }
 0x2e6   : > { %1725 = vpow2.f32 %v640_v35  ;;  %v1242_v35 = vld [vmem:[#allocation10 + $0x18] sm:$0xff] }
 0x2f0   : > { %v1726_v36 = vpop.eup %1725 }
 0x2f1   : > { %v642_v37 = vsel %vm557_vm2, %v1726_v36, 0.0 }
 0x2f2   : > { %643 = vadd.xlane.f32.xlu0 %v642_v37 }
 0x308   : > { %890 = vrot.lane.b32.xlu0 %v474_v15, %s1970_s19 }
 0x37f   : > { %v644_v43 = vpop.xlane.xlu0 %643 }
 0x380   : > { %1727 = vrcp.f32 %v644_v43 }
 0x383   : > { %v891_v44 = vpop.permute.xlu0 %890 }
 0x384   : > { %1573 = vmatpush3.xpose.msk.msra.mxu0 %vm557_vm2, %v891_v44 }
 0x385   : > { %1582 = vmatprep.subr.mxu0 %v1968_v1 }
 0x387   : > { %1575 = vmatmul.mubr.msk.f32.vlgmr.msra.gmra.mrb[4].mxu0 %vm557_vm2, %v889_v42 }
 0x388   : > { %1583 = vmatpush3.xpose.msk.msra.mxu0 %vm557_vm2, %v1058_v45  ;;  %1584 = vmatprep.mubr.msk.f32.mxu0 %vm1967_vm0, %v1968_v1 }
 0x389   : > { %1621 = vmatprep.subr.bf16.mxu0 %v1966_v0 }
 0x38a   : > { %v1728_v46 = vpop.eup %1727 }
 0x38b   : > { %v646_v48 = vmul.f32 %v1728_v46, %v1726_v36  ;;  %1585 = vmatmul.mubr.msk.f32.vlgmr.msra.gmra.mrb[6].mxu0 %vm557_vm2, %v1056_v47  ;;  %v1625_v36 = vpack.c.bf16 %v1242_v35, %v1241_v34  ;;  %v1477_v47 = vld [vmem:[%s2413_s5] ss:$0 sm:$0xff] }
 0x38c   : > { %1600 = vmatprep.mubr.msk.f32.mxu0 %vm1967_vm0, %v1968_v1  ;;  %1623 = vmatpush3.bf16.msra.mxu0 %v1622_v33 }
 0x38d   : > { %1560 = vmatmul.mubr.msk.f32.vlgmr.msra.gmra.mrb[4].mxu1 %vm557_vm2, %v646_v48  ;;  %1624 = vmatprep.subr.bf16.mxu0 %v1966_v0 }
 0x38e   : > { %1563 = vmatpush3.xpose.msk.msra.mxu1 %vm557_vm2, %v723_v40  ;;  %1564 = vmatprep.mubr.msk.f32.mxu1 %vm1967_vm0, %v1968_v1 }
 0x38f   : > { %1567 = vmatprep.subr.mxu1 %v1968_v1 }
 0x390   : > { %1626 = vmatpush3.bf16.msra.mxu0 %v1625_v36 }
 0x391   : > { %1565 = vmatmul.mubr.msk.f32.vlgmr.msra.gmra.mrb[6].mxu1 %vm557_vm2, %v721_v41 }
 0x392   : > { %1569 = vmatprep.mubr.msk.f32.mxu1 %vm1967_vm0, %v1968_v1 }
 0x45a   : > { %v962_v49 = vpop.f32.mrb[4].mxu0 }
 0x45b   : > { %v966_v50 = vmul.f32 0.17677669, %v962_v49  ;;  %v1576_v51 = vpop.f32.mrb[5].mxu0 }
 0x45d   : > { %v967_v52 = vsel %vm556_vm3, %v966_v50, -inf }
 0x45e   : > { %v1129_v53 = vpop.f32.mrb[6].mxu0  ;;  %v968_v54 = vsel %vm557_vm2, %v967_v52, -inf }
 0x45f   : > { %969 = vmax.xlane.f32.xlu0 %v968_v54  ;;  %v1586_v55 = vpop.f32.mrb[7].mxu0  ;;  %v1133_v59 = vmul.f32 0.17677669, %v1129_v53 }
 0x460   : > { %v2324_v56 = vpop.f32.mrb[4].mxu1 }
 0x461   : > { %v1561_v57 = vpop.f32.mrb[5].mxu1  ;;  %v1134_v2 = vsel %vm556_vm3, %v1133_v59, -inf }
 0x462   : > { %v1135_v3 = vsel %vm557_vm2, %v1134_v2, -inf }
 0x464   : > { %v794_v58 = vpop.f32.mrb[6].mxu1 }
 0x465   : > { %v798_v60 = vmul.f32 0.17677669, %v794_v58  ;;  %v1566_v61 = vpop.f32.mrb[7].mxu1 }
 0x467   : > { %v799_v62 = vsel %vm556_vm3, %v798_v60, -inf }
 0x468   : > { %v800_v63 = vsel %vm557_vm2, %v799_v62, -inf }
 0x469   : > { %801 = vmax.xlane.f32.xlu1 %v800_v63 }
 0x46d   : > { %1136 = vmax.xlane.f32.xlu1 %v1135_v3 }
 0x4ec   : > { %v970_v4 = vpop.xlane.xlu0 %969 }
 0x4ed   : > { %v971_v5 = vsub.f32 %v967_v52, %v970_v4 }
 0x4ef   : > { %v972_v6 = vmul.f32 1.442695, %v971_v5 }
 0x4f1   : > { %1729 = vpow2.f32 %v972_v6 }
 0x4f6   : > { %v802_v7 = vpop.xlane.xlu1 %801 }
 0x4f7   : > { %v803_v15 = vsub.f32 %v799_v62, %v802_v7 }
 0x4f9   : > { %v804_v16 = vmul.f32 1.442695, %v803_v15 }
 0x4fa   : > { %v1137_v8 = vpop.xlane.xlu1 %1136 }
 0x4fb   : > { %v1730_v9 = vpop.eup %1729  ;;  %v1138_v10 = vsub.f32 %v1134_v2, %v1137_v8 }
 0x4fc   : > { %v974_v11 = vsel %vm557_vm2, %v1730_v9, 0.0 }
 0x4fd   : > { %v1139_v12 = vmul.f32 1.442695, %v1138_v10  ;;  %975 = vadd.xlane.f32.xlu0 %v974_v11 }
 0x4ff   : > { %1731 = vpow2.f32 %v1139_v12 }
 0x500   : > { %1733 = vpow2.f32 %v804_v16 }
 0x509   : > { %v1732_v13 = vpop.eup %1731 }
 0x50a   : > { %v1141_v14 = vsel %vm557_vm2, %v1732_v13, 0.0  ;;  %v1734_v17 = vpop.eup %1733 }
 0x50b   : > { %1142 = vadd.xlane.f32.xlu1 %v1141_v14  ;;  %v806_v18 = vsel %vm557_vm2, %v1734_v17, 0.0 }
 0x513   : > { %812 = vrot.lane.b32.xlu0 %v2298_v38, %s1969_s28  ;;  %s2363_s28 = scalar_lea.hbm %s2414_s6, %s1480_s11 }
 0x51c   : > { %979 = vrot.lane.b32.xlu1 %v2298_v38, %s1970_s19  ;;  %s1325_s19 = scalar_lea.sflag [#allocation4], %s2239_s14 }
 0x540   : > { %807 = vadd.xlane.f32.xlu1 %v806_v18 }
 0x551   : > { %1146 = vrot.lane.b32.xlu1 %v2298_v38, %s1971_s12  ;;  %s1887_s12 = sshll.u32 %s1975_s29, 4  ;;  %s1888_s12 = int_to_ptr.vmem [resolvable:$false] %s1887_s12 }
 0x552   : > { %p1890_p12 = scmp.lt.s32.totalorder %s2365_s16, %s1888_s12 }
 0x58a   : > { %v976_v19 = vpop.xlane.xlu0 %975 }
 0x58e   : > { %v813_v20 = vpop.permute.xlu0 %812 }
 0x58f   : > { %1568 = vmatpush3.msra.mxu1 %v813_v20 }
 0x590   : > { %1577 = vmatprep.subr.mxu1 %v1968_v1 }
 0x598   : > { %v1143_v21 = vpop.xlane.xlu1 %1142 }
 0x59c   : > { %v980_v22 = vpop.permute.xlu1 %979 }
 0x5cd   : > { %v808_v23 = vpop.xlane.xlu1 %807 }
 0x5ce   : > { %1735 = vrcp.f32 %v808_v23 }
 0x5cf   : > { %1737 = vrcp.f32 %v976_v19 }
 0x5d0   : > { %1739 = vrcp.f32 %v1143_v21 }
 0x5d1   : > { %v1147_v29 = vpop.permute.xlu1 %1146 }
 0x5d8   : > { %v1736_v24 = vpop.eup %1735 }
 0x5d9   : > { %v810_v25 = vmul.f32 %v1736_v24, %v1734_v17  ;;  %v1738_v26 = vpop.eup %1737 }
 0x5da   : > { %v978_v27 = vmul.f32 %v1738_v26, %v1730_v9  ;;  %v1740_v28 = vpop.eup %1739 }
 0x5db   : > { %1570 = vmatmul.mubr.msk.f32.vlgmr.msra.gmra.mrb[8].mxu1 %vm557_vm2, %v810_v25  ;;  %v1145_v30 = vmul.f32 %v1740_v28, %v1732_v13 }
 0x5dc   : > { %1578 = vmatpush3.msra.mxu1 %v980_v22  ;;  %1579 = vmatprep.mubr.msk.f32.mxu1 %vm1967_vm0, %v1968_v1 }
 0x5dd   : > { %1587 = vmatprep.subr.mxu1 %v1968_v1 }
 0x5df   : > { %1580 = vmatmul.mubr.msk.f32.vlgmr.msra.gmra.mrb[10].mxu1 %vm557_vm2, %v978_v27 }
 0x5e0   : > { %1588 = vmatpush3.msra.mxu1 %v1147_v29  ;;  %1589 = vmatprep.mubr.msk.f32.mxu1 %vm1967_vm0, %v1968_v1 }
 0x5e3   : > { %1590 = vmatmul.mubr.msk.f32.vlgmr.msra.gmra.mrb[12].mxu1 %vm557_vm2, %v1145_v30 }
 0x6ae   : > { %v884_v37 = vpop.f32.mrb[8].mxu1 }
 0x6af   : > { %1223 = vrot.lane.b32.xlu0 %v884_v37, %s1972_s13  ;;  %v1571_v38 = vpop.f32.mrb[9].mxu1  ;;  %s1889_s13 = scalar_lea.vmem %s1888_s12, 256 }
 0x6b0   : > { %p1891_p3 = scmp.lt.s32.totalorder %s1889_s13, %s1883_s27 }
 0x6b2   : > { %v1051_v39 = vpop.f32.mrb[10].mxu1  ;;  %p1892_p13 = por %p1891_p3, %p1890_p12 }
 0x6b3   : > { %1227 = vrot.lane.b32.xlu1 %v1051_v39, %s1973_s30  ;;  %v1581_v1 = vpop.f32.mrb[11].mxu1 }
 0x6b4   : > { %p1893_p0 = pnand %p1892_p13, %p1886_p9 }
 0x6b6   : > { %v1218_v40 = vpop.f32.mrb[12].mxu1 }
 0x6b7   : > { %1231 = vrot.lane.b32.xlu0 %v1218_v40, %s1974_s7  ;;  %v1591_v41 = vpop.f32.mrb[13].mxu1 }
 0x721   : > { %v1224_v42 = vpop.permute.xlu0 %1223 }
 0x722   : > { %v1234_v43 = vsel %vm557_vm2, %v2324_v56, %v1224_v42 }
 0x725   : > { %v1228_v0 = vpop.permute.xlu1 %1227 }
 0x726   : > { %v1236_v44 = vsel %vm1235_vm4, %v1234_v43, %v1228_v0 }
 0x729   : > { %v1232_v45 = vpop.permute.xlu0 %1231 }
 0x72a   : > { %v1238_v46 = vsel %vm1237_vm5, %v1236_v44, %v1232_v45 }
 0x72b   : > { %1601 = vmatmul.mubr.msk.f32.vlgmr.msra.gmra.mrb[8].mxu0 %vm330_vm1, %v1238_v46 }
 0x7fe   : > { %v1319_v48 = vpop.f32.mrb[8].mxu0 }
 0x7ff   : > { %v1320_v49 = vadd.f32 %v1477_v47, %v1319_v48  ;;  %v1602_v50 = vpop.f32.mrb[9].mxu0 }
 0x801   : > { %1323 = vst.msk [vmem:[%s324_s9] sm:$0xff] %vm330_vm1, %v1320_v49 }
 0x802   : > { %1896 = shalt.err (!%p1893_p0)
}
 0x803   : > { %s1897_s14 = scalar_lea.hbm %s2363_s28, 128  ;;  %s1901_s10 = scalar_lea.hbm %s2414_s6, 256 }
 0x804   : > { %p1898_p2 = scmp.ne.s32.totalorder %s2363_s28, %s1897_s14  ;;  %p1902_p10 = scmp.lt.u32.totalorder %s2363_s28, %s2414_s6 }
 0x805   : > { %p1903_p11 = scmp.lt.u32.totalorder %s1901_s10, %s1897_s14  ;;  %p1905_p6 = scmp.lt.u32.totalorder %s1897_s14, %s2363_s28 }
 0x806   : > { %p1899_p8 = pnand %p1898_p2, %p2432_p5 }
 0x807   : > { %p1904_p1 = por %p1903_p11, %p1902_p10 }
 0x808   : > { %p1900_p4 = pneg %p1899_p8 }
 0x809   : > { %p1906_p7 = por %p1905_p6, %p1904_p1 }
 0x80b   : > { %p1907_p9 = pnand %p1906_p7, %p1900_p4 }
 0x80d   : > { %1910 = shalt.err (!%p1907_p9)
}
 0x80e   : > { %1645 = dma.vmem_to_hbm [thread:$0]  (%p2432_p5), %s2365_s16, 128, %s2363_s28, %s1325_s19  }
 0x80f PF: > { %s1350_s9 = sand.u32 1, %s1945_s21   ;;  %p2433_p12 = scmp.ne.s32.totalorder %s2425_s25, 0 }
 0x810   : > { %p2434_p3 = scmp.ge.s32.totalorder %s1957_s24, 2  ;;  %s1351_s8 = scalar_lea.sflag [#allocation4], %s1350_s9 }
 0x812   : > { %p1665_p13 = pnand %p2434_p3, %p2433_p12 }
 0x814   : > { %1940 = dma.done.wait (!%p1665_p13), %s1351_s8, 128  }
 0x815   : > { %1942 = vsyncadd (!%p1665_p13), %s1351_s8, 4294967168  ;;  %p21_p0 = scmp.ge.s32.totalorder %s2163_s15, 4   ;;  %s2435_s21 = smov %s1949_s22 }
 0x816   : > { %s2436_s22 = smov %s1953_s23  ;;  %s2437_s23 = smov %s2174_s26 }
 0x817   : > { %s2438_s24 = smov %s2163_s15  ;;  %23 = sbr.rel (!%p21_p0) target bundleno = 7 (0x7), region = 105 }
 0x81e   :  { %1356 = vsyncpa [#allocation3], 1 }
 0x81f   :  { %1358 = vsyncpa [#allocation3 + $0x1], 1 }
 0x820   :  { %1359 = vsyncpa [#allocation6], 1 }
 0x821   :  { %1360 = vsyncpa [#allocation9], 1 }
 0x822   :  { %1361 = vsyncpa [#allocation4], 1 }
 0x823   :  { %1363 = vsyncpa [#allocation4 + $0x1], 1 }

</bundles_post_ra>
